<compile_context>
chip_gen: v5e
topology: v5e:2x2
jax: 0.10.0
libtpu: 0.0.40
codegen_flags: <defaults>
</compile_context>

<pallas_src>
import functools

import jax
import jax.numpy as jnp
from jax.experimental import pallas as pl
from jax.experimental.pallas import tpu as pltpu


_LANES = 128
_MIN_SPLIT_BYTES = 1 << 20  # only force multi-block grids above ~1 MiB of data


def _chip_generation() -> int:
    """Best-effort TPU generation (7/6/5/4). 0 if unknown."""
    try:
        kind = jax.devices()[0].device_kind.lower()
    except Exception:
        return 0
    for gen in (7, 6, 5, 4):
        if ("v%d" % gen) in kind or ("tpu%d" % gen) in kind:
            return gen
    return 0


_GEN = _chip_generation()


def _default_block_bytes() -> int:
    if _GEN >= 7:
        return 8 * 1024 * 1024   # 3.2 TB/s HBM: big blocks to amortize ~0.35 us/step
    if _GEN == 6:
        return 4 * 1024 * 1024
    return 2 * 1024 * 1024       # v5e / unknown: 2 MiB already ~85%+ of roofline


def _min_grid_blocks() -> int:
    return 4 if _GEN >= 7 else 3  # v7x has 2 TCs; each wants >=2 blocks to pipeline


def _sublane_multiple(dtype) -> int:
    # Sub-32-bit dtypes pack along sublanes: f32 -> 8, bf16 -> 16, int8/fp8 -> 32.
    itemsize = jnp.dtype(dtype).itemsize
    return 8 * max(1, 4 // max(itemsize, 1))


def _round_up(x: int, m: int) -> int:
    return ((x + m - 1) // m) * m


# ---------------------------------------------------------------------------
# Pallas kernel: elementwise map of `f` over a (block_rows, 128) VMEM tile.
# ---------------------------------------------------------------------------
def _lambda_kernel(x_ref, o_ref, *, f):
    o_ref[...] = f(x_ref[...]).astype(o_ref.dtype)


def _swish(x):
    # v6e/v7x have bf16 VPU + EUP: keep bf16 in bf16 (halves vreg pressure and
    # EUP element count, which matters once DMA time shrinks on v7x). On v5e
    # (no bf16 VPU/EUP) or for narrower dtypes, upcast to f32.
    if x.dtype == jnp.bfloat16 and _GEN >= 6:
        return x * jax.nn.sigmoid(x)
    xf = x.astype(jnp.float32)
    return xf * jax.nn.sigmoid(xf)


class Lambda:
    """JAX/Pallas equivalent of torch Lambda(f): forward(x) = f(x) elementwise."""

    def __init__(self, f, target_block_bytes=None):
        self.f = f
        self.target_block_bytes = (
            _default_block_bytes() if target_block_bytes is None else target_block_bytes
        )

    def __call__(self, x):
        orig_shape = x.shape
        orig_dtype = x.dtype
        n = x.size
        if n == 0:
            return x  # empty tensor: nothing to do (avoid a zero-length grid)

        flat = x.reshape(-1)
        rem = n % _LANES
        main = n - rem

        if main == 0:
            # Fewer than 128 elements: a kernel launch is pure overhead.
            return self.f(flat).astype(orig_dtype).reshape(orig_shape)

        out_main = self._pallas_map(flat[:main].reshape(main // _LANES, _LANES))
        out_flat = out_main.reshape(-1)
        if rem:
            # <128-element tail handled with plain jnp instead of padding the
            # input and re-slicing the whole output (saves two full HBM passes).
            # TODO(synk): a masked pltpu.store edge block in a 1D-blocked kernel
            # would also avoid this concatenate copy.
            tail = self.f(flat[main:]).astype(orig_dtype)
            out_flat = jnp.concatenate([out_flat, tail])
        return out_flat.reshape(orig_shape)

    def _pallas_map(self, x2d):
        rows, lanes = x2d.shape
        dtype = x2d.dtype
        itemsize = jnp.dtype(dtype).itemsize
        sub = _sublane_multiple(dtype)

        # Block rows from the byte target, sublane-rounded.
        br = max(sub, self.target_block_bytes // (lanes * itemsize))
        br = _round_up(br, sub)
        rows_up = _round_up(rows, sub)

        # For non-tiny tensors, prefer enough grid steps (>= _min_grid_blocks)
        # to keep the double-buffer — and on v7x both TensorCores — busy, over
        # hitting the block-byte target.
        total_bytes = rows * lanes * itemsize
        if total_bytes >= _MIN_SPLIT_BYTES:
            per_block = _round_up(pl.cdiv(rows_up, _min_grid_blocks()), sub)
            br = min(br, max(per_block, sub))
        br = min(br, rows_up)

        grid = (pl.cdiv(rows, br),)  # ragged last block is masked by Pallas

        block_bytes = br * lanes * itemsize
        # 2x double-buffered input + 2x output + headroom; capped well under
        # v7x's 64 MiB physical VMEM (v5e/v6e have 128 MiB physical).
        vmem_limit = min(
            48 * 1024 * 1024,
            max(32 * 1024 * 1024, 4 * block_bytes + 8 * 1024 * 1024),
        )

        cost = pl.CostEstimate(
            flops=2 * rows * lanes,
            transcendentals=rows * lanes,
            bytes_accessed=2 * rows * lanes * itemsize,
        )

        return pl.pallas_call(
            functools.partial(_lambda_kernel, f=self.f),
            out_shape=jax.ShapeDtypeStruct((rows, lanes), dtype),
            grid_spec=pltpu.PrefetchScalarGridSpec(
                num_scalar_prefetch=0,
                grid=grid,
                in_specs=[pl.BlockSpec((br, lanes), lambda i: (i, 0))],
                out_specs=pl.BlockSpec((br, lanes), lambda i: (i, 0)),
            ),
            compiler_params=pltpu.CompilerParams(
                dimension_semantics=("parallel",),  # shards grid across TCs (v7x)
                vmem_limit_bytes=vmem_limit,
            ),
            cost_estimate=cost,
        )(x2d)


if __name__ == "__main__":
    lam = Lambda(_swish)

    # NCHW, small shapes: batch=2, channels=4, spatial=16x16 (multiple of 128).
    x = jax.random.normal(jax.random.PRNGKey(0), (2, 4, 16, 16), dtype=jnp.float32)
    y = jax.block_until_ready(lam(x))
    y_ref = x * jax.nn.sigmoid(x)
    assert y.shape == x.shape and y.dtype == x.dtype
    assert jnp.max(jnp.abs(y - y_ref)) < 1e-5

    # Ragged size (n % 128 != 0) exercises the kernel-prefix + jnp-tail path.
    x2 = jax.random.normal(jax.random.PRNGKey(1), (3, 5, 11, 13), dtype=jnp.float32)
    y2 = jax.block_until_ready(lam(x2))
    y2_ref = x2 * jax.nn.sigmoid(x2)
    assert y2.shape == x2.shape and y2.dtype == x2.dtype
    assert jnp.max(jnp.abs(y2 - y2_ref)) < 1e-5

    print("KERNEL_OK")
</pallas_src>

<mosaic_0001>
module attributes {stable_mosaic.version = 11 : i64} {
  func.func @_lambda_kernel(%arg0: i32, %arg1: memref<16x128xf32, #tpu.memory_space<vmem>>, %arg2: memref<16x128xf32, #tpu.memory_space<vmem>>) attributes {dimension_semantics = [#tpu.dimension_semantics<parallel>], iteration_bounds = array<i64: 1>, scalar_prefetch = 0 : i64, scratch_operands = 0 : i64, tpu.core_type = #tpu.core_type<tc>, window_params = [{transform_indices = @transform_0, window_bounds = array<i64: 16, 128>}, {transform_indices = @transform_1, window_bounds = array<i64: 16, 128>}]} {
    %c0 = arith.constant 0 : index
    %c0_0 = arith.constant 0 : index
    %0 = vector.load %arg1[%c0, %c0_0] : memref<16x128xf32, #tpu.memory_space<vmem>>, vector<16x128xf32>
    %1 = arith.negf %0 : vector<16x128xf32>
    %2 = math.exp %1 : vector<16x128xf32>
    %cst = arith.constant 1.000000e+00 : f32
    %3 = vector.broadcast %cst : f32 to vector<16x128xf32>
    %4 = arith.addf %3, %2 : vector<16x128xf32>
    %5 = arith.divf %3, %4 : vector<16x128xf32>
    %6 = arith.mulf %0, %5 : vector<16x128xf32>
    %c0_1 = arith.constant 0 : index
    %c0_2 = arith.constant 0 : index
    %7 = vector.load %arg2[%c0_1, %c0_2] : memref<16x128xf32, #tpu.memory_space<vmem>>, vector<16x128xf32>
    tpu.vector_store %arg2[%c0_1, %c0_2], %6 {strides = array<i32>} : memref<16x128xf32, #tpu.memory_space<vmem>>, vector<16x128xf32>,
    return
  }
  func.func @transform_0(%arg0: i32) -> (i32, i32) {
    %c0_i32 = arith.constant 0 : i32
    %c0_i32_0 = arith.constant 0 : i32
    return %arg0, %c0_i32 : i32, i32
  }
  func.func @transform_1(%arg0: i32) -> (i32, i32) {
    %c0_i32 = arith.constant 0 : i32
    %c0_i32_0 = arith.constant 0 : i32
    return %arg0, %c0_i32 : i32, i32
  }
}

</mosaic_0001>

<bundles_post_ra>
// kernel: tpu_custom_call.1
= control target key start
LH: loop header
LB: loop body
LE: loop exit
PB: predicated region body
PF: predicated region fallthrough
CT: control target
= control target key end

     0   :  { %6 = vsyncpa [#allocation3], 0  ;;  %s180_s0 = inlined_call_operand.hbm [shape: f32[16,128], index: 0, kind: input, shape index: {}]   ;;  %s181_s1 = inlined_call_operand.hbm [shape: f32[16,128], index: 1, kind: output, shape index: {}]  }
   0x1   :  { %7 = vsyncpa [#allocation4], 0  ;;  %s12_s8 = sshll.u32 %s180_s0, 4  ;;  %s154_s9 = smov [#allocation2]   ;;  %s13_s8 = int_to_ptr.hbm [resolvable:$true] %s12_s8 }
   0x2   :  { %s14_s10 = sshll.u32 %s154_s9, 4  ;;  %s155_s11 = smov 128   ;;  %s15_s10 = int_to_ptr.vmem [resolvable:$true] %s14_s10 }
   0x3   :  { %s156_s12 = smov 8  }
   0x4   :  { %20 = dma.hbm_to_vmem [thread:$0]  %s13_s8, 256, %s15_s10, [#allocation3], %s155_s11, %s155_s11, %s156_s12  }
   0x5   :  { %150 = dma.done.wait [#allocation3], 256  }
   0x6   :  { %151 = vsyncadd [#allocation3], 4294967040  ;;  %v25_v0 = vld [vmem:[#allocation2] sm:$0xff]  ;;  %v26_v1 = vld [vmem:[#allocation2 + $0x8] sm:$0xff]  ;;  %s157_s0 = smov [#allocation5]   ;;  %s75_s16 = sshll.u32 %s181_s1, 4  ;;  %s76_s16 = int_to_ptr.hbm [resolvable:$true] %s75_s16 }
   0x7   :  { %v88_v2 = vmul.f32 -1.442695, %v25_v0  ;;  %v89_v3 = vmul.f32 -1.442695, %v26_v1  ;;  %s73_s13 = sshll.u32 %s157_s0, 4  ;;  %s74_s13 = int_to_ptr.vmem [resolvable:$true] %s73_s13 }
   0x9   :  { %94 = vpow2.f32 %v88_v2 }
   0xa   :  { %96 = vpow2.f32 %v89_v3 }
   0xf   :  { %v95_v4 = vpop.eup %94 }
  0x10   :  { %v97_v5 = vpop.eup %96  ;;  %v33_v6 = vadd.f32 1.0, %v95_v4 }
  0x11   :  { %v34_v7 = vadd.f32 1.0, %v97_v5 }
  0x12   :  { %98 = vrcp.f32 %v33_v6  ;;  %vm40_vm0 = vweird.f32 %v33_v6  ;;  %v46_v11 = vand.u32 2147483648, %v33_v6  ;;  %v44_v14 = vand.u32 2147483647, %v33_v6 }
  0x13   :  { %100 = vrcp.f32 %v34_v7  ;;  %v61_v15 = vand.u32 2147483648, %v34_v7  ;;  %vm55_vm2 = vweird.f32 %v34_v7  ;;  %v59_v17 = vand.u32 2147483647, %v34_v7 }
  0x14   :  { %v47_v19 = vor.u32 1.1754944e-38, %v46_v11  ;;  %vm45_vm5 = vcmp.eq.f32.partialorder %v44_v14, 8.507059e+37 }
  0x15   :  { %v62_v22 = vor.u32 1.1754944e-38, %v61_v15  ;;  %vm60_vm7 = vcmp.eq.f32.partialorder %v59_v17, 8.507059e+37 }
  0x18   :  { %v99_v8 = vpop.eup %98 }
  0x19   :  { %v101_v9 = vpop.eup %100  ;;  %v36_v10 = vmul.f32 %v99_v8, %v33_v6  ;;  %vm41_vm1 = vweird.f32 %v99_v8 }
  0x1a   :  { %v51_v12 = vmul.f32 %v101_v9, %v34_v7  ;;  %vm56_vm3 = vweird.f32 %v101_v9  ;;  %vm42_vm4 = vmor %vm40_vm0, %vm41_vm1 }
  0x1b   :  { %v37_v13 = vsub.f32 1.0, %v36_v10  ;;  %vm57_vm6 = vmor %vm55_vm2, %vm56_vm3 }
  0x1c   :  { %v52_v16 = vsub.f32 1.0, %v51_v12 }
  0x1d   :  { %v38_v18 = vmul.f32 %v99_v8, %v37_v13 }
  0x1e   :  { %v53_v20 = vmul.f32 %v101_v9, %v52_v16 }
  0x1f   :  { %v39_v21 = vadd.f32 %v99_v8, %v38_v18 }
  0x20   :  { %v54_v23 = vadd.f32 %v101_v9, %v53_v20 }
  0x21   :  { %v43_v24 = vsel %vm42_vm4, %v99_v8, %v39_v21 }
  0x22   :  { %v48_v25 = vsel %vm45_vm5, %v47_v19, %v43_v24  ;;  %v58_v26 = vsel %vm57_vm6, %v101_v9, %v54_v23 }
  0x23   :  { %v65_v27 = vmul.f32 %v48_v25, %v25_v0  ;;  %v63_v28 = vsel %vm60_vm7, %v62_v22, %v58_v26 }
  0x24   :  { %v66_v29 = vmul.f32 %v63_v28, %v26_v1 }
  0x25   :  { %67 = vst [vmem:[#allocation5] sm:$0xff] %v65_v27 }
  0x26   :  { %68 = vst [vmem:[#allocation5 + $0x8] sm:$0xff] %v66_v29 }
  0x27   :  { %81 = dma.vmem_to_hbm [thread:$0]  %s74_s13, 256, %s76_s16, [#allocation4], %s155_s11, %s155_s11, %s156_s12  }
  0x28   :  { %152 = dma.done.wait [#allocation4], 256  }
  0x29   :  { %153 = vsyncadd [#allocation4], 4294967040 }
  0x2a   :  { %86 = vsyncpa [#allocation3], 1 }
  0x2b   :  { %87 = vsyncpa [#allocation4], 1 }

</bundles_post_ra>
